<compile_context>
chip_gen: v5e
topology: v5e:2x2
jax: 0.10.0
libtpu: 0.0.40
codegen_flags: <defaults>
</compile_context>

<pallas_src>
import functools

import jax
import jax.numpy as jnp
from jax import lax
from jax.experimental import pallas as pl
from jax.experimental.pallas import tpu as pltpu

_PARALLEL = getattr(pltpu, "PARALLEL", "parallel")
_ARBITRARY = getattr(pltpu, "ARBITRARY", "arbitrary")
_CORE_PARALLEL = getattr(pltpu, "CORE_PARALLEL", _PARALLEL)


def _round_up(x, m):
    return (x + m - 1) // m * m


# ----------------------------------------------------------------------------
# Shared MLP epilogue: stack avg & max, one dot -> ReLU -> dot, sum, sigmoid.
# ----------------------------------------------------------------------------
def _mlp_epilogue(avg, mx, w1t, w2t):
    # avg, mx: (M, C) f32 ; w1t: (C, Hh) ; w2t: (Hh, C)
    m = avg.shape[0]
    both = jnp.concatenate([avg, mx], axis=0)                       # (2M, C)
    h = jnp.dot(both, w1t, preferred_element_type=jnp.float32)      # (2M, Hh)
    h = jnp.maximum(h, 0.0)                                         # ReLU
    y = jnp.dot(h, w2t, preferred_element_type=jnp.float32)         # (2M, C)
    return jax.nn.sigmoid(y[:m, :] + y[m:, :])                      # (M, C)


# ----------------------------------------------------------------------------
# Small-S path: one grid step handles TN batch elements, full spatial extent.
# ----------------------------------------------------------------------------
def _ca_small_kernel(x_ref, w1t_ref, w2t_ref, o_ref, *, inv_s):
    # x_ref : (TN, C, S) native dtype ; o_ref : (TN, 1, C)
    xt = x_ref[...].astype(jnp.float32)                             # cast in-kernel
    avg = jnp.sum(xt, axis=2) * inv_s                               # (TN, C)
    mx = jnp.max(xt, axis=2)                                        # (TN, C)
    att = _mlp_epilogue(avg, mx, w1t_ref[...], w2t_ref[...])        # (TN, C)
    o_ref[...] = att.reshape(o_ref.shape).astype(o_ref.dtype)


# ----------------------------------------------------------------------------
# Large-S path: spatial axis tiled (lane-dense, multiples of 128), f32 VMEM
# accumulators carried across the reduction axis; fused MLP at the last step.
# ----------------------------------------------------------------------------
def _ca_spatial_kernel(x_ref, w1t_ref, w2t_ref, o_ref, sum_acc, max_acc, *,
                       true_s, tile_s, needs_mask, inv_s):
    # x_ref   : (1, C, tile_s) native dtype (one batch element)
    # o_ref   : (1, 1, C)
    # sum_acc / max_acc : (1, C) f32 scratch
    s = pl.program_id(1)
    n_s = pl.num_programs(1)

    @pl.when(s == 0)
    def _init():
        sum_acc[...] = jnp.zeros_like(sum_acc)
        max_acc[...] = jnp.full_like(max_acc, -jnp.inf)

    def _accumulate(masked):
        xt = x_ref[...].astype(jnp.float32)                         # (1, C, tile_s)
        if masked:
            lane = lax.broadcasted_iota(jnp.int32, (1, 1, tile_s), 2)
            valid = (s * tile_s + lane) < true_s                    # (1, 1, tile_s)
            sum_acc[...] = sum_acc[...] + jnp.sum(
                jnp.where(valid, xt, 0.0), axis=2)
            max_acc[...] = jnp.maximum(
                max_acc[...], jnp.max(jnp.where(valid, xt, -jnp.inf), axis=2))
        else:
            sum_acc[...] = sum_acc[...] + jnp.sum(xt, axis=2)
            max_acc[...] = jnp.maximum(max_acc[...], jnp.max(xt, axis=2))

    if needs_mask:
        # Interior tiles: plain add/max.  Edge tile (last step) only: masked path.
        @pl.when(s < n_s - 1)
        def _plain():
            _accumulate(False)

        @pl.when(s == n_s - 1)
        def _edge():
            _accumulate(True)
    else:
        _accumulate(False)

    @pl.when(s == n_s - 1)
    def _finalize():
        avg = sum_acc[...] * inv_s                                  # (1, C)
        mx = max_acc[...]                                           # (1, C)
        att = _mlp_epilogue(avg, mx, w1t_ref[...], w2t_ref[...])    # (1, C)
        o_ref[...] = att.reshape(o_ref.shape).astype(o_ref.dtype)


# ----------------------------------------------------------------------------
# Wrapper
# ----------------------------------------------------------------------------
def channel_attention(x_nchw, w1_oihw, w2_oihw, *,
                      max_tile_bytes=6 * 1024 * 1024,
                      vmem_limit_bytes=32 * 1024 * 1024):
    """x: (N, C, H, W); w1: (C//r, C, 1, 1); w2: (C, C//r, 1, 1) -> (N, C, 1, 1)."""
    N, C, H, W = x_nchw.shape
    Hh = w1_oihw.shape[0]
    assert w1_oihw.shape[:2] == (Hh, C), w1_oihw.shape
    assert w2_oihw.shape[:2] == (C, Hh), w2_oihw.shape
    assert Hh >= 1
    S = H * W
    out_dtype = x_nchw.dtype

    # Contiguous reshape only -- x keeps its native dtype (no extra HBM pass).
    x = x_nchw.reshape(N, C, S)
    w1t = jnp.transpose(w1_oihw.reshape(Hh, C).astype(jnp.float32))   # (C, Hh)
    w2t = jnp.transpose(w2_oihw.reshape(C, Hh).astype(jnp.float32))   # (Hh, C)

    # Budget in f32-equivalent elements (covers the in-kernel f32 cast temp).
    budget_elems = max(1, max_tile_bytes // 4)
    c_pad = _round_up(C, 8)
    s_pad = _round_up(S, 128)
    per_batch_elems = c_pad * s_pad

    def _cparams(sem):
        return pltpu.CompilerParams(dimension_semantics=sem,
                                    vmem_limit_bytes=vmem_limit_bytes)

    if per_batch_elems <= budget_elems:
        # --------- small-S path: tile the batch axis, full spatial extent per step
        tn_budget = max(1, budget_elems // per_batch_elems)
        # keep at least 2 grid steps when N > 1 so megacore can split the work
        tn = max(1, min(N, tn_budget, pl.cdiv(N, 2) if N > 1 else 1))
        grid = (pl.cdiv(N, tn),)
        kernel = functools.partial(_ca_small_kernel, inv_s=1.0 / S)

        def build(sem):
            return pl.pallas_call(
                kernel,
                out_shape=jax.ShapeDtypeStruct((N, 1, C), out_dtype),
                grid_spec=pltpu.PrefetchScalarGridSpec(
                    num_scalar_prefetch=0,
                    grid=grid,
                    in_specs=[
                        pl.BlockSpec((tn, C, S), lambda b: (b, 0, 0)),
                        pl.BlockSpec((C, Hh), lambda b: (0, 0)),
                        pl.BlockSpec((Hh, C), lambda b: (0, 0)),
                    ],
                    out_specs=pl.BlockSpec((tn, 1, C), lambda b: (b, 0, 0)),
                ),
                compiler_params=_cparams(sem))

        core_sem = (_CORE_PARALLEL,)
        plain_sem = (_PARALLEL,)
    else:
        # --------- large-S path: spatial tiling (lane axis, multiples of 128)
        max_tile = max(128, (budget_elems // max(C, 1)) // 128 * 128)
        tile_s = min(max_tile, s_pad)
        num_s = pl.cdiv(S, tile_s)
        needs_mask = (num_s * tile_s != S)
        kernel = functools.partial(
            _ca_spatial_kernel,
            true_s=S, tile_s=tile_s, needs_mask=needs_mask, inv_s=1.0 / S)

        def build(sem):
            return pl.pallas_call(
                kernel,
                out_shape=jax.ShapeDtypeStruct((N, 1, C), out_dtype),
                grid_spec=pltpu.PrefetchScalarGridSpec(
                    num_scalar_prefetch=0,
                    grid=(N, num_s),                       # batch x spatial tiles
                    in_specs=[
                        pl.BlockSpec((1, C, tile_s), lambda n, s: (n, 0, s)),
                        pl.BlockSpec((C, Hh), lambda n, s: (0, 0)),
                        pl.BlockSpec((Hh, C), lambda n, s: (0, 0)),
                    ],
                    out_specs=pl.BlockSpec((1, 1, C), lambda n, s: (n, 0, 0)),
                    scratch_shapes=[
                        pltpu.VMEM((1, C), jnp.float32),   # spatial sum
                        pltpu.VMEM((1, C), jnp.float32),   # spatial max
                    ],
                ),
                compiler_params=_cparams(sem))

        core_sem = (_CORE_PARALLEL, _ARBITRARY)
        plain_sem = (_PARALLEL, _ARBITRARY)

    try:
        out = build(core_sem)(x, w1t, w2t)
    except Exception:
        # Fallback for chips / JAX versions where CORE_PARALLEL is not supported.
        out = build(plain_sem)(x, w1t, w2t)

    return out.reshape(N, C, 1, 1)


# ----------------------------------------------------------------------------
# Pure-JAX reference for self-check
# ----------------------------------------------------------------------------
def _reference(x, w1, w2):
    N, C, H, W = x.shape
    Hh = w1.shape[0]
    xf = x.astype(jnp.float32)
    avg = jnp.mean(xf, axis=(2, 3))                             # (N, C)
    mx = jnp.max(xf, axis=(2, 3))                               # (N, C)
    w1m = w1.reshape(Hh, C).astype(jnp.float32)
    w2m = w2.reshape(C, Hh).astype(jnp.float32)

    def fc(v):
        h = jnp.maximum(v @ w1m.T, 0.0)
        return h @ w2m.T

    y = jax.nn.sigmoid(fc(avg) + fc(mx))
    return y.reshape(N, C, 1, 1).astype(x.dtype)


if __name__ == "__main__":
    # ChannelAttention(in_planes=64, ratio=16)  -> hidden = 4
    C, ratio = 64, 16
    Hh = C // ratio

    key = jax.random.PRNGKey(0)
    kx1, kx2, kx3, k1, k2 = jax.random.split(key, 5)
    w1 = jax.random.normal(k1, (Hh, C, 1, 1), dtype=jnp.float32) * 0.1  # fc[0] weight
    w2 = jax.random.normal(k2, (C, Hh, 1, 1), dtype=jnp.float32) * 0.1  # fc[2] weight

    # --- Test 1: default config (small-S batched path), f32 input -------------
    x1 = jax.random.normal(kx1, (2, C, 16, 16), dtype=jnp.float32)
    o1 = jax.block_until_ready(channel_attention(x1, w1, w2))
    r1 = _reference(x1, w1, w2)
    assert o1.shape == (2, C, 1, 1), o1.shape
    err1 = float(jnp.max(jnp.abs(o1 - r1)))
    assert jnp.allclose(o1, r1, atol=1e-5, rtol=1e-5), err1

    # --- Test 2: forced spatial-tiling path with edge-tile masking, N=3 -------
    x2 = jax.random.normal(kx2, (3, C, 15, 15), dtype=jnp.float32)
    o2 = jax.block_until_ready(channel_attention(x2, w1, w2, max_tile_bytes=32 * 1024))
    r2 = _reference(x2, w1, w2)
    err2 = float(jnp.max(jnp.abs(o2 - r2)))
    assert jnp.allclose(o2, r2, atol=1e-5, rtol=1e-5), err2

    # --- Test 3: bf16 input (native-dtype HBM loads, f32 in-kernel), N=3 ------
    x3 = jax.random.normal(kx3, (3, C, 16, 16), dtype=jnp.float32).astype(jnp.bfloat16)
    o3 = jax.block_until_ready(channel_attention(x3, w1, w2))
    r3 = _reference(x3, w1, w2)
    assert o3.dtype == jnp.bfloat16, o3.dtype
    err3 = float(jnp.max(jnp.abs(o3.astype(jnp.float32) - r3.astype(jnp.float32))))
    assert jnp.allclose(o3.astype(jnp.float32), r3.astype(jnp.float32), atol=2e-2), err3

    print("KERNEL_OK")
</pallas_src>

<mosaic_0001>
module attributes {stable_mosaic.version = 11 : i64} {
  func.func @_ca_small_kernel(%arg0: i32, %arg1: memref<1x64x256xf32, #tpu.memory_space<vmem>>, %arg2: memref<64x4xf32, #tpu.memory_space<vmem>>, %arg3: memref<4x64xf32, #tpu.memory_space<vmem>>, %arg4: memref<1x1x64xf32, #tpu.memory_space<vmem>>) attributes {dimension_semantics = [#tpu.dimension_semantics<core_parallel>], iteration_bounds = array<i64: 2>, scalar_prefetch = 0 : i64, scratch_operands = 0 : i64, tpu.core_type = #tpu.core_type<tc>, window_params = [{transform_indices = @transform_0, window_bounds = array<i64: 1, 64, 256>}, {pipeline_mode = #tpu.pipeline_mode<synchronous>, transform_indices = @transform_1, window_bounds = array<i64: 64, 4>}, {pipeline_mode = #tpu.pipeline_mode<synchronous>, transform_indices = @transform_2, window_bounds = array<i64: 4, 64>}, {transform_indices = @transform_3, window_bounds = array<i64: 1, 1, 64>}]} {
    %c0 = arith.constant 0 : index
    %c0_0 = arith.constant 0 : index
    %c0_1 = arith.constant 0 : index
    %0 = vector.load %arg1[%c0, %c0_0, %c0_1] : memref<1x64x256xf32, #tpu.memory_space<vmem>>, vector<1x64x256xf32>
    %cst = arith.constant dense<0.000000e+00> : vector<1x64xf32>
    %1 = vector.multi_reduction <add>, %0, %cst [2] : vector<1x64x256xf32> to vector<1x64xf32>
    %cst_2 = arith.constant 3.906250e-03 : f32
    %2 = vector.broadcast %cst_2 : f32 to vector<1x64xf32>
    %3 = arith.mulf %1, %2 : vector<1x64xf32>
    %cst_3 = arith.constant dense<0xFF800000> : vector<1x64xf32>
    %4 = vector.multi_reduction <maximumf>, %0, %cst_3 [2] : vector<1x64x256xf32> to vector<1x64xf32>
    %c0_4 = arith.constant 0 : index
    %c0_5 = arith.constant 0 : index
    %5 = vector.load %arg2[%c0_4, %c0_5] : memref<64x4xf32, #tpu.memory_space<vmem>>, vector<64x4xf32>
    %c0_6 = arith.constant 0 : index
    %c0_7 = arith.constant 0 : index
    %6 = vector.load %arg3[%c0_6, %c0_7] : memref<4x64xf32, #tpu.memory_space<vmem>>, vector<4x64xf32>
    %7 = tpu.concatenate %3, %4 in 0 : vector<1x64xf32>, vector<1x64xf32> -> vector<2x64xf32>
    %cst_8 = arith.constant dense<0.000000e+00> : vector<2x4xf32>
    %8 = tpu.matmul %7, %5, %cst_8 {dimension_numbers = #tpu.dot_dimension_numbers<[1], [0], [0], [1], [0, 0, 1, 1], [], []>} : vector<2x64xf32>, vector<64x4xf32>, vector<2x4xf32> -> vector<2x4xf32>
    %cst_9 = arith.constant 0.000000e+00 : f32
    %9 = vector.broadcast %cst_9 : f32 to vector<2x4xf32>
    %10 = arith.maximumf %8, %9 : vector<2x4xf32>
    %cst_10 = arith.constant dense<0.000000e+00> : vector<2x64xf32>
    %11 = tpu.matmul %10, %6, %cst_10 {dimension_numbers = #tpu.dot_dimension_numbers<[1], [0], [0], [1], [0, 0, 1, 1], [], []>} : vector<2x4xf32>, vector<4x64xf32>, vector<2x64xf32> -> vector<2x64xf32>
    %12 = vector.extract_strided_slice %11 {offsets = [0, 0], sizes = [1, 64], strides = [1, 1]} : vector<2x64xf32> to vector<1x64xf32>
    %13 = vector.extract_strided_slice %11 {offsets = [1, 0], sizes = [1, 64], strides = [1, 1]} : vector<2x64xf32> to vector<1x64xf32>
    %14 = arith.addf %12, %13 : vector<1x64xf32>
    %15 = arith.negf %14 : vector<1x64xf32>
    %16 = math.exp %15 : vector<1x64xf32>
    %cst_11 = arith.constant 1.000000e+00 : f32
    %17 = vector.broadcast %cst_11 : f32 to vector<1x64xf32>
    %18 = arith.addf %17, %16 : vector<1x64xf32>
    %19 = arith.divf %17, %18 : vector<1x64xf32>
    %20 = vector.shape_cast %19 : vector<1x64xf32> to vector<1x1x64xf32>
    %c0_12 = arith.constant 0 : index
    %c0_13 = arith.constant 0 : index
    %c0_14 = arith.constant 0 : index
    %21 = vector.load %arg4[%c0_12, %c0_13, %c0_14] : memref<1x1x64xf32, #tpu.memory_space<vmem>>, vector<1x1x64xf32>
    tpu.vector_store %arg4[%c0_12, %c0_13, %c0_14], %20 {strides = array<i32>} : memref<1x1x64xf32, #tpu.memory_space<vmem>>, vector<1x1x64xf32>,
    return
  }
  func.func @transform_0(%arg0: i32) -> (i32, i32, i32) {
    %c0_i32 = arith.constant 0 : i32
    %c0_i32_0 = arith.constant 0 : i32
    %c0_i32_1 = arith.constant 0 : i32
    return %arg0, %c0_i32, %c0_i32_0 : i32, i32, i32
  }
  func.func @transform_1(%arg0: i32) -> (i32, i32) {
    %c0_i32 = arith.constant 0 : i32
    %c0_i32_0 = arith.constant 0 : i32
    %c0_i32_1 = arith.constant 0 : i32
    return %c0_i32, %c0_i32_0 : i32, i32
  }
  func.func @transform_2(%arg0: i32) -> (i32, i32) {
    %c0_i32 = arith.constant 0 : i32
    %c0_i32_0 = arith.constant 0 : i32
    %c0_i32_1 = arith.constant 0 : i32
    return %c0_i32, %c0_i32_0 : i32, i32
  }
  func.func @transform_3(%arg0: i32) -> (i32, i32, i32) {
    %c0_i32 = arith.constant 0 : i32
    %c0_i32_0 = arith.constant 0 : i32
    %c0_i32_1 = arith.constant 0 : i32
    return %arg0, %c0_i32, %c0_i32_0 : i32, i32, i32
  }
}

module attributes {stable_mosaic.version = 11 : i64} {
  func.func @_ca_small_kernel(%arg0: i32, %arg1: memref<1x64x256xf32, #tpu.memory_space<vmem>>, %arg2: memref<64x4xf32, #tpu.memory_space<vmem>>, %arg3: memref<4x64xf32, #tpu.memory_space<vmem>>, %arg4: memref<1x1x64xf32, #tpu.memory_space<vmem>>) attributes {dimension_semantics = [#tpu.dimension_semantics<parallel>], iteration_bounds = array<i64: 2>, scalar_prefetch = 0 : i64, scratch_operands = 0 : i64, tpu.core_type = #tpu.core_type<tc>, window_params = [{transform_indices = @transform_0, window_bounds = array<i64: 1, 64, 256>}, {pipeline_mode = #tpu.pipeline_mode<synchronous>, transform_indices = @transform_1, window_bounds = array<i64: 64, 4>}, {pipeline_mode = #tpu.pipeline_mode<synchronous>, transform_indices = @transform_2, window_bounds = array<i64: 4, 64>}, {transform_indices = @transform_3, window_bounds = array<i64: 1, 1, 64>}]} {
    %c0 = arith.constant 0 : index
    %c0_0 = arith.constant 0 : index
    %c0_1 = arith.constant 0 : index
    %0 = vector.load %arg1[%c0, %c0_0, %c0_1] : memref<1x64x256xf32, #tpu.memory_space<vmem>>, vector<1x64x256xf32>
    %cst = arith.constant dense<0.000000e+00> : vector<1x64xf32>
    %1 = vector.multi_reduction <add>, %0, %cst [2] : vector<1x64x256xf32> to vector<1x64xf32>
    %cst_2 = arith.constant 3.906250e-03 : f32
    %2 = vector.broadcast %cst_2 : f32 to vector<1x64xf32>
    %3 = arith.mulf %1, %2 : vector<1x64xf32>
    %cst_3 = arith.constant dense<0xFF800000> : vector<1x64xf32>
    %4 = vector.multi_reduction <maximumf>, %0, %cst_3 [2] : vector<1x64x256xf32> to vector<1x64xf32>
    %c0_4 = arith.constant 0 : index
    %c0_5 = arith.constant 0 : index
    %5 = vector.load %arg2[%c0_4, %c0_5] : memref<64x4xf32, #tpu.memory_space<vmem>>, vector<64x4xf32>
    %c0_6 = arith.constant 0 : index
    %c0_7 = arith.constant 0 : index
    %6 = vector.load %arg3[%c0_6, %c0_7] : memref<4x64xf32, #tpu.memory_space<vmem>>, vector<4x64xf32>
    %7 = tpu.concatenate %3, %4 in 0 : vector<1x64xf32>, vector<1x64xf32> -> vector<2x64xf32>
    %cst_8 = arith.constant dense<0.000000e+00> : vector<2x4xf32>
    %8 = tpu.matmul %7, %5, %cst_8 {dimension_numbers = #tpu.dot_dimension_numbers<[1], [0], [0], [1], [0, 0, 1, 1], [], []>} : vector<2x64xf32>, vector<64x4xf32>, vector<2x4xf32> -> vector<2x4xf32>
    %cst_9 = arith.constant 0.000000e+00 : f32
    %9 = vector.broadcast %cst_9 : f32 to vector<2x4xf32>
    %10 = arith.maximumf %8, %9 : vector<2x4xf32>
    %cst_10 = arith.constant dense<0.000000e+00> : vector<2x64xf32>
    %11 = tpu.matmul %10, %6, %cst_10 {dimension_numbers = #tpu.dot_dimension_numbers<[1], [0], [0], [1], [0, 0, 1, 1], [], []>} : vector<2x4xf32>, vector<4x64xf32>, vector<2x64xf32> -> vector<2x64xf32>
    %12 = vector.extract_strided_slice %11 {offsets = [0, 0], sizes = [1, 64], strides = [1, 1]} : vector<2x64xf32> to vector<1x64xf32>
    %13 = vector.extract_strided_slice %11 {offsets = [1, 0], sizes = [1, 64], strides = [1, 1]} : vector<2x64xf32> to vector<1x64xf32>
    %14 = arith.addf %12, %13 : vector<1x64xf32>
    %15 = arith.negf %14 : vector<1x64xf32>
    %16 = math.exp %15 : vector<1x64xf32>
    %cst_11 = arith.constant 1.000000e+00 : f32
    %17 = vector.broadcast %cst_11 : f32 to vector<1x64xf32>
    %18 = arith.addf %17, %16 : vector<1x64xf32>
    %19 = arith.divf %17, %18 : vector<1x64xf32>
    %20 = vector.shape_cast %19 : vector<1x64xf32> to vector<1x1x64xf32>
    %c0_12 = arith.constant 0 : index
    %c0_13 = arith.constant 0 : index
    %c0_14 = arith.constant 0 : index
    %21 = vector.load %arg4[%c0_12, %c0_13, %c0_14] : memref<1x1x64xf32, #tpu.memory_space<vmem>>, vector<1x1x64xf32>
    tpu.vector_store %arg4[%c0_12, %c0_13, %c0_14], %20 {strides = array<i32>} : memref<1x1x64xf32, #tpu.memory_space<vmem>>, vector<1x1x64xf32>,
    return
  }
  func.func @transform_0(%arg0: i32) -> (i32, i32, i32) {
    %c0_i32 = arith.constant 0 : i32
    %c0_i32_0 = arith.constant 0 : i32
    %c0_i32_1 = arith.constant 0 : i32
    return %arg0, %c0_i32, %c0_i32_0 : i32, i32, i32
  }
  func.func @transform_1(%arg0: i32) -> (i32, i32) {
    %c0_i32 = arith.constant 0 : i32
    %c0_i32_0 = arith.constant 0 : i32
    %c0_i32_1 = arith.constant 0 : i32
    return %c0_i32, %c0_i32_0 : i32, i32
  }
  func.func @transform_2(%arg0: i32) -> (i32, i32) {
    %c0_i32 = arith.constant 0 : i32
    %c0_i32_0 = arith.constant 0 : i32
    %c0_i32_1 = arith.constant 0 : i32
    return %c0_i32, %c0_i32_0 : i32, i32
  }
  func.func @transform_3(%arg0: i32) -> (i32, i32, i32) {
    %c0_i32 = arith.constant 0 : i32
    %c0_i32_0 = arith.constant 0 : i32
    %c0_i32_1 = arith.constant 0 : i32
    return %arg0, %c0_i32, %c0_i32_0 : i32, i32, i32
  }
}

</mosaic_0001>

<bundles_post_ra>
// kernel: tpu_custom_call.1
= control target key start
LH: loop header
LB: loop body
LE: loop exit
PB: predicated region body
PF: predicated region fallthrough
CT: control target
= control target key end

     0   :  { %8 = vsyncpa [#allocation3], 0  ;;  %s862_s0 = inlined_call_operand.hbm [shape: f32[2,64,256], index: 0, kind: input, shape index: {}]   ;;  %s863_s1 = inlined_call_operand.vmem [shape: f32[64,4], index: 1, kind: input, shape index: {}]   ;;  %s864_s2 = inlined_call_operand.vmem [shape: f32[4,64], index: 2, kind: input, shape index: {}]   ;;  %s865_s3 = inlined_call_operand.hbm [shape: f32[2,1,64], index: 3, kind: output, shape index: {}]  }
   0x1   :  { %10 = vsyncpa [#allocation3 + $0x1], 0 }
   0x2   :  { %11 = vsyncpa [#allocation4], 0 }
   0x3   :  { %13 = vsyncpa [#allocation4 + $0x1], 0  ;;  %s681_s12 = smov 0   ;;  %s683_s13 = smov 0  }
   0x4   :  { %s685_s14 = smov 0   ;;  %s687_s15 = smov 0  }
   0x5 LB: > { %s702_s16 = sadd.s32 4294967295, %s657_s15   ;;  %s494_s17 = sadd.s32 4294967294, %s657_s15   ;;  %s657_s15 = sphi %s687_s15, %s875_s15   ;;  %s653_s14 = sphi %s685_s14, %s874_s14   ;;  %s649_s13 = sphi %s683_s13, %s873_s13   ;;  %s645_s12 = sphi %s681_s12, %s872_s12  }
   0x6   : > { %s706_s18 = sadd.s32 1, %s657_s15   ;;  %s26_s19 = sadd.s32 1, %s653_s14 }
   0x7   : > { %s23_s20 = ssub.s32 %s657_s15, %s706_s18  ;;  %p33_p0 = scmp.ne.s32.totalorder %s653_s14, %s649_s13 }
   0x8   : > { %p24_p1 = scmp.eq.s32.totalorder %s23_s20, 0  ;;  %p34_p2 = scmp.eq.s32.totalorder %s657_s15, 0 }
   0x9   : > { %p39_p3 = scmp.ne.s32.totalorder %s649_s13, %s645_s12  ;;  %p40_p4 = scmp.eq.s32.totalorder %s702_s16, 0 }
   0xa   : > { %s718_s21 = scalar_select %p24_p1, %s653_s14, %s26_s19  }
   0xb   : > { %p720_p5 = por %p34_p2, %p33_p0  ;;  %p724_p6 = por %p40_p4, %p39_p3 }
   0xc   : > { %p105_p7 = scmp.eq.s32.totalorder %s702_s16, 1  ;;  %p111_p8 = scmp.eq.s32.totalorder %s494_s17, 1 }
   0xd   : > { %p521_p10 = scmp.lt.s32.totalorder %s657_s15, 2  ;;  %s137_s26 = sand.u32 1, %s653_s14  }
   0xe   : > { %p731_p11 = por %p105_p7, %p33_p0  ;;  %p735_p12 = por %p111_p8, %p39_p3 }
   0xf   : > { %s508_s27 = sshll.u32 %s657_s15, 7  ;;  %s497_s28 = sshll.u32 %s137_s26, 7 }
  0x10   : > { %s146_s4 = scalar_lea.hbm %s862_s0, %s508_s27  ;;  %s141_s6 = scalar_lea.vmem [#allocation2], %s497_s28 }
  0x11   : > { %s147_s5 = sshll.u32 %s146_s4, 4  ;;  %s149_s7 = sshll.u32 %s141_s6, 4  ;;  %s148_s5 = int_to_ptr.hbm [resolvable:$true] %s147_s5  ;;  %s150_s7 = int_to_ptr.vmem [resolvable:$true] %s149_s7 }
  0x12   : > { %p746_p13 = pnand %p521_p10, %p720_p5  ;;  %p500_p0 = scmp.ge.s32.totalorder %s657_s15, 1 }
  0x13   : > { %p157_p1 = scmp.lt.s32.totalorder %s657_s15, 3  ;;  %s138_s9 = scalar_lea.sflag [#allocation3], %s137_s26 }
  0x14   : > { %s561_s10 = sshra.s32 %s148_s5, 4  ;;  %p565_p3 = pneg %p746_p13  ;;  %s562_s10 = int_to_ptr.hbm [resolvable:$true] %s561_s10 }
  0x15   : > { %s563_s11 = scalar_lea.hbm %s562_s10, 128  ;;  %s568_s20 = scalar_lea.hbm %s862_s0, 256 }
  0x16   : > { %p564_p2 = scmp.ne.s32.totalorder %s562_s10, %s563_s11  ;;  %p569_p5 = scmp.lt.s32.totalorder %s562_s10, %s862_s0 }
  0x17   : > { %p570_p8 = scmp.lt.s32.totalorder %s568_s20, %s563_s11 }
  0x18   : > { %p566_p4 = pnand %p565_p3, %p564_p2 }
  0x19   : > { %p571_p10 = por %p570_p8, %p569_p5 }
  0x1a   : > { %p567_p7 = pneg %p566_p4 }
  0x1c   : > { %p572_p9 = pnand %p571_p10, %p567_p7 }
  0x1e   : > { %575 = shalt.err (!%p572_p9)
}
  0x1f   : > { %s659_s26 = smov 256   ;;  %s660_s28 = smov 16  }
  0x20   : > { %516 = dma.hbm_to_vmem [thread:$0]  (!%p746_p13), %s148_s5, 2048, %s150_s7, %s138_s9, %s659_s26, %s659_s26, %s660_s28  }
  0x21   : > { %p158_p2 = pnand %p500_p0, %p157_p1 }
  0x22   : > { %s767_s29 = sand.u32 (!%p158_p2), 1, %s649_s13  }
  0x23   : > { %161 = sbr.rel (%p158_p2) target bundleno = 494 (0x1ee), region = 32  ;;  %s501_s30 = sshll.u32 (!%p158_p2), %s767_s29, 7 }
  0x24   : > { %s164_s4 = scalar_lea.sflag (!%p158_p2), [#allocation3], %s767_s29  ;;  %s771_s6 = scalar_lea.vmem (!%p158_p2), [#allocation2], %s501_s30 }
  0x28   : > { %636 = dma.done.wait (%p724_p6), %s164_s4, 2048  }
  0x29   : > { %638 = vsyncadd (%p724_p6), %s164_s4, 4294965248  ;;  %v194_v0 = vld [vmem:[%s771_s6 + $0x20] sm:$0xff]  ;;  %v195_v1 = vld [vmem:[%s771_s6 + $0x28] sm:$0xff]  ;;  %v279_v49 = vlaneseq  ;;  %vm284_vm0 = vcmask 130112   ;;  %vm288_vm1 = vcmask 195712   ;;  %vm292_vm2 = vcmask 261312   ;;  %s424_s8 = scalar_lea.hbm %s865_s3, %s702_s16 }
  0x2a   : > { %v190_v2 = vld [vmem:[%s771_s6] sm:$0xff]  ;;  %v212_v3 = vadd.f32 %v195_v1, %v194_v0  ;;  %v191_v4 = vld [vmem:[%s771_s6 + $0x8] sm:$0xff]  ;;  %v196_v7 = vld [vmem:[%s771_s6 + $0x30] sm:$0xff]  ;;  %v244_v18 = vmax.f32 %v194_v0, %v195_v1  ;;  %vm296_vm3 = vcmask 326912   ;;  %vm300_vm4 = vcmask 392512   ;;  %s189_s9 = scalar_lea.vmem [#allocation5], %s767_s29 }
  0x2b   : > { %v238_v5 = vmax.f32 %v190_v2, %v191_v4  ;;  %v206_v6 = vadd.f32 %v191_v4, %v190_v2  ;;  %v197_v8 = vld [vmem:[%s771_s6 + $0x38] sm:$0xff]  ;;  %v192_v9 = vld [vmem:[%s771_s6 + $0x10] sm:$0xff]  ;;  %v198_v14 = vld [vmem:[%s771_s6 + $0x40] sm:$0xff]  ;;  %v280_v50 = vand.u32 127, %v279_v49  ;;  %vm304_vm5 = vcmask 458112   ;;  %s426_s10 = sshll.u32 %s189_s9, 4  ;;  %s427_s10 = int_to_ptr.vmem [resolvable:$true] %s426_s10 }
  0x2c   : > { %213 = vadd.xlane.f32.xlu1 %v212_v3  ;;  %v193_v10 = vld [vmem:[%s771_s6 + $0x18] sm:$0xff]  ;;  %v215_v11 = vadd.f32 %v197_v8, %v196_v7  ;;  %v199_v15 = vld [vmem:[%s771_s6 + $0x48] sm:$0xff]  ;;  %v200_v16 = vld [vmem:[%s771_s6 + $0x50] sm:$0xff]  ;;  %v247_v24 = vmax.f32 %v196_v7, %v197_v8  ;;  %vm308_vm6 = vcmask 523712   ;;  %vm335_vm7 = vcmask 1040384   ;;  %s428_s11 = sshll.u32 %s424_s8, 4  ;;  %s429_s11 = int_to_ptr.hbm [resolvable:$true] %s428_s11 }
  0x2d   : > { %239 = vmax.xlane.f32.xlu2 %v238_v5  ;;  %207 = vadd.xlane.f32.xlu0 %v206_v6  ;;  %v241_v12 = vmax.f32 %v192_v9, %v193_v10  ;;  %v209_v13 = vadd.f32 %v193_v10, %v192_v9  ;;  %v201_v17 = vld [vmem:[%s771_s6 + $0x58] sm:$0xff]  ;;  %v218_v19 = vadd.f32 %v199_v15, %v198_v14  ;;  %v202_v21 = vld [vmem:[%s771_s6 + $0x60] sm:$0xff]  ;;  %v203_v22 = vld [vmem:[%s771_s6 + $0x68] sm:$0xff]  ;;  %v282_v54 = vadd.s32 4294967288, %v280_v50  ;;  %s416_s16 = scalar_lea.sflag [#allocation4], %s767_s29  ;;  %s605_s17 = sshra.s32 %s429_s11, 4  ;;  %s606_s17 = int_to_ptr.hbm [resolvable:$true] %s605_s17 }
  0x2e   : > { %v221_v20 = vadd.f32 %v201_v17, %v200_v16  ;;  %v224_v23 = vadd.f32 %v203_v22, %v202_v21  ;;  %v250_v25 = vmax.f32 %v198_v14, %v199_v15  ;;  %v204_v26 = vld [vmem:[%s771_s6 + $0x70] sm:$0xff]  ;;  %v205_v27 = vld [vmem:[%s771_s6 + $0x78] sm:$0xff]  ;;  %v253_v28 = vmax.f32 %v200_v16, %v201_v17  ;;  %v267_v37 = vld [vmem:[%s863_s1 + $0x28] sm:$0xff]  ;;  %s607_s19 = scalar_lea.hbm %s606_s17, 1  ;;  %s611_s27 = scalar_lea.hbm %s865_s3, 2 }
  0x2f   : > { %v227_v29 = vadd.f32 %v205_v27, %v204_v26  ;;  %v256_v30 = vmax.f32 %v202_v21, %v203_v22  ;;  %v259_v31 = vmax.f32 %v204_v26, %v205_v27  ;;  %v269_v32 = vld [vmem:[%s863_s1 + $0x38] sm:$0xff]  ;;  %v268_v33 = vld [vmem:[%s863_s1 + $0x30] sm:$0xff]  ;;  %v266_v38 = vld [vmem:[%s863_s1 + $0x20] sm:$0xff]  ;;  %v286_v58 = vadd.s32 4294967280, %v280_v50  ;;  %p608_p6 = scmp.ne.s32.totalorder %s606_s17, %s607_s19  ;;  %p612_p0 = scmp.lt.s32.totalorder %s606_s17, %s865_s3 }
  0x30   : > { %349 = vmatpush.msra.mxu0 %v269_v32  ;;  %v265_v39 = vld [vmem:[%s863_s1 + $0x18] sm:$0xff]  ;;  %v264_v40 = vld [vmem:[%s863_s1 + $0x10] sm:$0xff]  ;;  %v263_v44 = vld [vmem:[%s863_s1 + $0x8] sm:$0xff]  ;;  %v290_v61 = vadd.s32 4294967272, %v280_v50  ;;  %v294_v3 = vadd.s32 4294967264, %v280_v50  ;;  %v298_v7 = vadd.s32 4294967256, %v280_v50  ;;  %p613_p1 = scmp.lt.s32.totalorder %s611_s27, %s607_s19 }
  0x31   : > { %v262_v45 = vld [vmem:[%s863_s1] sm:$0xff]  ;;  %v302_v8 = vadd.s32 4294967248, %v280_v50  ;;  %v306_v21 = vadd.s32 4294967240, %v280_v50  ;;  %vm337_vm8 = vcmask 523264   ;;  %vm366_vm9 = vcmask 1043456   ;;  %p609_p9 = pnand %p608_p6, %p731_p11 }
  0x32   : > { %350 = vmatpush.msra.mxu0 %v268_v33  ;;  %vm362_vm10 = vcmask 31744   ;;  %vm413_vm14 = vcmask 516096   ;;  %p614_p3 = por %p613_p1, %p612_p0 }
  0x33   : > { %p610_p13 = pneg %p609_p9 }
  0x34   : > { %216 = vadd.xlane.f32.xlu1 %v215_v11  ;;  %351 = vmatpush.msra.mxu0 %v267_v37 }
  0x35   : > { %242 = vmax.xlane.f32.xlu2 %v241_v12  ;;  %210 = vadd.xlane.f32.xlu0 %v209_v13  ;;  %p615_p4 = pnand %p614_p3, %p610_p13 }
  0x36   : > { %352 = vmatpush.msra.mxu0 %v266_v38 }
  0x38   : > { %353 = vmatpush.msra.mxu0 %v265_v39 }
  0x3a   : > { %354 = vmatpush.msra.mxu0 %v264_v40  ;;  %v270_v40 = vld [vmem:[%s864_s2] sm:$0xf] }
  0x3b   : > { %503 = vmatpush.msk.msra.mxu1 %vm366_vm9, %v270_v40 }
  0x3c   : > { %245 = vmax.xlane.f32.xlu1 %v244_v18  ;;  %355 = vmatpush.msra.mxu0 %v263_v44 }
  0x3d   : > { %219 = vadd.xlane.f32.xlu0 %v218_v19  ;;  %222 = vadd.xlane.f32.xlu2 %v221_v20 }
  0x3e   : > { %356 = vmatpush.msra.mxu0 %v262_v45 }
  0x44   : > { %225 = vadd.xlane.f32.xlu1 %v224_v23 }
  0x45   : > { %248 = vmax.xlane.f32.xlu0 %v247_v24  ;;  %251 = vmax.xlane.f32.xlu2 %v250_v25 }
  0x4c   : > { %254 = vmax.xlane.f32.xlu1 %v253_v28 }
  0x4d   : > { %228 = vadd.xlane.f32.xlu0 %v227_v29  ;;  %257 = vmax.xlane.f32.xlu2 %v256_v30 }
  0x55   : > { %260 = vmax.xlane.f32.xlu0 %v259_v31 }
  0x9f   : > { %v214_v34 = vpop.xlane.xlu1 %213 }
  0xa0   : > { %v240_v35 = vpop.xlane.xlu2 %239  ;;  %v208_v36 = vpop.xlane.xlu0 %207  ;;  %v232_v59 = vmul.f32 0.00390625, %v214_v34 }
  0xa1   : > { %v230_v53 = vmul.f32 0.00390625, %v208_v36  ;;  %v319_v62 = vperm.slane %v240_v35, %v280_v50 }
  0xa2   : > { %v287_v5 = vperm.slane %v232_v59, %v286_v58 }
  0xa3   : > { %v281_v60 = vperm.slane %v230_v53, %v280_v50 }
  0xa7   : > { %v217_v41 = vpop.xlane.xlu1 %216 }
  0xa8   : > { %v243_v42 = vpop.xlane.xlu2 %242  ;;  %v211_v43 = vpop.xlane.xlu0 %210  ;;  %v233_v63 = vmul.f32 0.00390625, %v217_v41 }
  0xa9   : > { %v231_v51 = vmul.f32 0.00390625, %v211_v43  ;;  %v320_v0 = vperm.slane %v243_v42, %v282_v54 }
  0xaa   : > { %v291_v11 = vperm.slane %v233_v63, %v290_v61 }
  0xab   : > { %v283_v57 = vperm.slane %v231_v51, %v282_v54  ;;  %v321_v12 = vsel %vm284_vm0, %v320_v0, %v319_v62 }
  0xad   : > { %v285_v1 = vsel %vm284_vm0, %v283_v57, %v281_v60 }
  0xae   : > { %v289_v13 = vsel %vm288_vm1, %v287_v5, %v285_v1 }
  0xaf   : > { %v246_v46 = vpop.xlane.xlu1 %245  ;;  %v293_v24 = vsel %vm292_vm2, %v291_v11, %v289_v13 }
  0xb0   : > { %v220_v47 = vpop.xlane.xlu0 %219  ;;  %v223_v48 = vpop.xlane.xlu2 %222  ;;  %v322_v2 = vperm.slane %v246_v46, %v286_v58 }
  0xb1   : > { %v234_v4 = vmul.f32 0.00390625, %v220_v47  ;;  %v235_v14 = vmul.f32 0.00390625, %v223_v48 }
  0xb2   : > { %v323_v15 = vsel %vm288_vm1, %v322_v2, %v321_v12 }
  0xb3   : > { %v295_v16 = vperm.slane %v234_v4, %v294_v3  ;;  %v299_v25 = vperm.slane %v235_v14, %v298_v7 }
  0xb5   : > { %v297_v26 = vsel %vm296_vm3, %v295_v16, %v293_v24 }
  0xb6   : > { %v301_v33 = vsel %vm300_vm4, %v299_v25, %v297_v26 }
  0xb7   : > { %v226_v52 = vpop.xlane.xlu1 %225 }
  0xb8   : > { %v249_v55 = vpop.xlane.xlu0 %248  ;;  %v252_v56 = vpop.xlane.xlu2 %251  ;;  %v236_v17 = vmul.f32 0.00390625, %v226_v52 }
  0xb9   : > { %v324_v6 = vperm.slane %v249_v55, %v290_v61  ;;  %v326_v18 = vperm.slane %v252_v56, %v294_v3 }
  0xba   : > { %v303_v27 = vperm.slane %v236_v17, %v302_v8 }
  0xbb   : > { %v325_v19 = vsel %vm292_vm2, %v324_v6, %v323_v15 }
  0xbc   : > { %v327_v28 = vsel %vm296_vm3, %v326_v18, %v325_v19  ;;  %v305_v36 = vsel %vm304_vm5, %v303_v27, %v301_v33 }
  0xbf   : > { %v255_v9 = vpop.xlane.xlu1 %254 }
  0xc0   : > { %v229_v10 = vpop.xlane.xlu0 %228  ;;  %v328_v20 = vperm.slane %v255_v9, %v298_v7  ;;  %v258_v23 = vpop.xlane.xlu2 %257 }
  0xc1   : > { %v237_v22 = vmul.f32 0.00390625, %v229_v10  ;;  %v330_v29 = vperm.slane %v258_v23, %v302_v8 }
  0xc2   : > { %v329_v30 = vsel %vm300_vm4, %v328_v20, %v327_v28 }
  0xc3   : > { %v307_v31 = vperm.slane %v237_v22, %v306_v21  ;;  %v331_v35 = vsel %vm304_vm5, %v330_v29, %v329_v30 }
  0xc5   : > { %v309_v37 = vsel %vm308_vm6, %v307_v31, %v305_v36 }
  0xc8   : > { %v261_v32 = vpop.xlane.xlu0 %260 }
  0xc9   : > { %v332_v34 = vperm.slane %v261_v32, %v306_v21 }
  0xcb   : > { %v333_v38 = vsel %vm308_vm6, %v332_v34, %v331_v35 }
  0xcc   : > { %v336_v39 = vsel %vm335_vm7, %v309_v37, %v333_v38 }
  0xcd   : > { %502 = vmatmul.msk.f32.vlgmr.msra.gmra.mxu0 %vm337_vm8, %v336_v39 }
 0x14a   : > { %v358_v41 = vpop.f32.mrf.mxu0 }
 0x14b   : > { %v361_v42 = vmax.f32 %v358_v41, 0.0 }
 0x14d   : > { %504 = vmatmul.msk.f32.vlgmr.msra.gmra.mxu1 %vm362_vm10, %v361_v42 }
 0x1ca   : > { %v387_v43 = vpop.f32.mrf.mxu1 }
 0x1cb   : > { %v391_v44 = vrot.slane %v387_v43, 1 }
 0x1cd   : > { %v393_v45 = vadd.f32 %v391_v44, %v387_v43 }
 0x1cf   : > { %v505_v46 = vmul.f32 -1.442695, %v393_v45 }
 0x1d1   : > { %557 = vpow2.f32 %v505_v46 }
 0x1d7   : > { %v558_v47 = vpop.eup %557 }
 0x1d8   : > { %v397_v48 = vadd.f32 1.0, %v558_v47 }
 0x1da   : > { %559 = vrcp.f32 %v397_v48  ;;  %v409_v52 = vand.u32 2147483648, %v397_v48  ;;  %v407_v54 = vand.u32 2147483647, %v397_v48  ;;  %vm403_vm12 = vweird.f32 %v397_v48 }
 0x1dc   : > { %v410_v56 = vor.u32 1.1754944e-38, %v409_v52  ;;  %vm408_vm15 = vcmp.eq.f32.partialorder %v407_v54, 8.507059e+37 }
 0x1e0   : > { %v560_v49 = vpop.eup %559 }
 0x1e1   : > { %v399_v50 = vmul.f32 %v560_v49, %v397_v48  ;;  %vm404_vm11 = vweird.f32 %v560_v49 }
 0x1e2   : > { %vm405_vm13 = vmor %vm403_vm12, %vm404_vm11 }
 0x1e3   : > { %v400_v51 = vsub.f32 1.0, %v399_v50 }
 0x1e5   : > { %v401_v53 = vmul.f32 %v560_v49, %v400_v51 }
 0x1e7   : > { %v402_v55 = vadd.f32 %v560_v49, %v401_v53 }
 0x1e9   : > { %v406_v57 = vsel %vm405_vm13, %v560_v49, %v402_v55 }
 0x1ea   : > { %v411_v58 = vsel %vm408_vm15, %v410_v56, %v406_v57 }
 0x1eb   : > { %414 = vst.msk [vmem:[%s189_s9] sm:$0x1] %vm413_vm14, %v411_v58 }
 0x1ec   : > { %618 = shalt.err (!%p615_p4)
}
 0x1ed   : > { %511 = dma.vmem_to_hbm [thread:$0]  (%p731_p11), %s427_s10, 16, %s429_s11, %s416_s16  }
 0x1ee PF: > { %s440_s29 = sand.u32 1, %s645_s12   ;;  %p871_p7 = scmp.ge.s32.totalorder %s657_s15, 2 }
 0x1ef   : > { %s441_s30 = scalar_lea.sflag [#allocation4], %s440_s29 }
 0x1f0   : > { %p518_p5 = pnand %p871_p7, %p735_p12 }
 0x1f2   : > { %p519_p8 = pneg %p518_p5 }
 0x1f4   : > { %640 = dma.done.wait (%p519_p8), %s441_s30, 16  }
 0x1f5   : > { %642 = vsyncadd (%p519_p8), %s441_s30, 4294967280  ;;  %p16_p10 = scmp.ge.s32.totalorder %s706_s18, 4   ;;  %s872_s12 = smov %s649_s13 }
 0x1f6   : > { %s873_s13 = smov %s653_s14  ;;  %s874_s14 = smov %s718_s21 }
 0x1f7   : > { %s875_s15 = smov %s706_s18  ;;  %18 = sbr.rel (!%p16_p10) target bundleno = 5 (0x5), region = 77 }
 0x1fc   :  { %446 = vsyncpa [#allocation3], 1 }
 0x1fd   :  { %448 = vsyncpa [#allocation3 + $0x1], 1 }
 0x1fe   :  { %449 = vsyncpa [#allocation4], 1 }
 0x1ff   :  { %451 = vsyncpa [#allocation4 + $0x1], 1 }

</bundles_post_ra>
